<compile_context>
chip_gen: v6e
topology: v6e:2x2x1
jax: 0.10.0
libtpu: 0.0.40
codegen_flags: <defaults>
</compile_context>

<pallas_src>
import functools

import jax
import jax.numpy as jnp
from jax import lax
from jax.experimental import pallas as pl
from jax.experimental.pallas import tpu as pltpu

LEAKY_SLOPE = 0.1


# ---------------------------------------------------------------------------
# Fused Pallas kernel: 3 x (conv + LeakyReLU) for Nb batch elements.
# ---------------------------------------------------------------------------
def _down2d_kernel(x_ref, w1_ref, b1_ref, w2_ref, b2_ref, w3_ref, b3_ref,
                   o_ref, pad1_ref, pad2_ref, *, f, k_target):
    Nb, Ho, Wo, k1 = x_ref.shape
    cmid = pad1_ref.shape[-1]
    cout = pad2_ref.shape[-1]
    fp = (f - 1) // 2
    M = Nb * Ho * Wo

    def leaky(v):
        return jnp.maximum(v, LEAKY_SLOPE * v)

    def conv_same(pad_ref, w_ref, b_ref, cin):
        # f x f stride-1 'same' conv: pack `tpg` taps per MXU pass into the
        # contraction dim (K ~<= k_target of real data) instead of one matmul
        # per tap against a mostly-zero K.
        tpg = max(1, k_target // cin)
        acc = None
        t = 0
        while t < f * f:
            te = min(f * f, t + tpg)
            chunks = []
            for tt in range(t, te):
                di, dj = tt // f, tt % f
                chunks.append(
                    pad_ref[:, di:di + Ho, dj:dj + Wo, :]
                    .astype(jnp.bfloat16).reshape(M, cin))
            patch = chunks[0] if len(chunks) == 1 else jnp.concatenate(chunks, axis=-1)
            part = jnp.dot(patch, w_ref[t * cin:te * cin, :],
                           preferred_element_type=jnp.float32)
            acc = part if acc is None else acc + part
            t = te
        return leaky(acc + b_ref[...])

    # ---- conv1: 4x4 stride-2 pad-1; wrapper already folded the 16 taps into
    #      the channel dim, so this is one dense-K MXU matmul.
    z1 = jnp.dot(x_ref[...].reshape(M, k1), w1_ref[...],
                 preferred_element_type=jnp.float32) + b1_ref[...]
    y1 = leaky(z1)                                             # (M, cmid) f32

    # ---- conv2: zero the padded scratch, write the interior, packed matmul.
    #      (Zeroing every step keeps the border correct even when the grid is
    #       split across TensorCores; cost is negligible.)
    pad1_ref[...] = jnp.zeros_like(pad1_ref)
    pad1_ref[:, fp:fp + Ho, fp:fp + Wo, :] = y1.reshape(Nb, Ho, Wo, cmid)
    y2 = conv_same(pad1_ref, w2_ref, b2_ref, cmid)             # (M, cout) f32

    # ---- conv3
    pad2_ref[...] = jnp.zeros_like(pad2_ref)
    pad2_ref[:, fp:fp + Ho, fp:fp + Wo, :] = y2.reshape(Nb, Ho, Wo, cout)
    y3 = conv_same(pad2_ref, w3_ref, b3_ref, cout)             # (M, cout) f32

    o_ref[...] = y3.reshape(Nb, Ho, Wo, cout)


# ---------------------------------------------------------------------------
# Wrapper-side layout prep (tiny XLA glue, done once per forward)
# ---------------------------------------------------------------------------
def _conv1_patches(x, Ho, Wo):
    """NCHW f32 -> (N, Ho, Wo, 16*Cin) bf16 im2col patches of the 4x4 s2 p1 conv."""
    N, Cin, H, W = x.shape
    xh = jnp.transpose(x, (0, 2, 3, 1))                        # NHWC
    xh = jnp.pad(xh, ((0, 0), (1, 1), (1, 1), (0, 0)))         # conv1 padding
    taps = [xh[:, di::2, dj::2, :][:, :Ho, :Wo, :]
            for di in range(4) for dj in range(4)]             # (di, dj) order
    return jnp.concatenate(taps, axis=-1).astype(jnp.bfloat16)


def _prep_w_packed(w):
    """(Cout, Cin, kh, kw) OIHW -> (kh*kw*Cin, Cout) bf16, tap-major (kh, kw, ci)."""
    co, ci, kh, kw = w.shape
    return jnp.transpose(w, (2, 3, 1, 0)).reshape(kh * kw * ci, co).astype(jnp.bfloat16)


def _prep_b(b):
    return b.reshape(1, b.shape[0]).astype(jnp.float32)


# ---------------------------------------------------------------------------
# Down2D forward
# ---------------------------------------------------------------------------
def down2d_forward(x, params, filter_size):
    N, Cin, H, W = x.shape
    assert H % 2 == 0 and W % 2 == 0, "Down2D Pallas kernel assumes even H, W"
    assert filter_size % 2 == 1, "filter_size must be odd"
    f = filter_size
    fp = (f - 1) // 2
    Ho, Wo = H // 2, W // 2
    cmid = params["w1"].shape[0]          # == in_channels
    Cout = params["w2"].shape[0]
    K1 = 16 * Cin

    # Batch blocking: fill the MXU M dim (~256 rows) but keep >=2 grid steps
    # when the batch allows so both v7x TensorCores get pipelined work.
    m_img = Ho * Wo
    Nb = min(N, max(1, -(-256 // m_img)))
    if N >= 2:
        Nb = max(1, min(Nb, N // 2))
    Npad = -(-N // Nb) * Nb

    xs = _conv1_patches(x, Ho, Wo)                             # (N,Ho,Wo,16*Cin) bf16
    if Npad != N:
        xs = jnp.pad(xs, ((0, Npad - N), (0, 0), (0, 0), (0, 0)))
    w1r = _prep_w_packed(params["w1"])                         # (16*Cin, cmid)
    w2r = _prep_w_packed(params["w2"])                         # (f*f*cmid, Cout)
    w3r = _prep_w_packed(params["w3"])                         # (f*f*Cout, Cout)
    b1r, b2r, b3r = _prep_b(params["b1"]), _prep_b(params["b2"]), _prep_b(params["b3"])

    flops = int(2 * Npad * Ho * Wo *
                (K1 * cmid + f * f * cmid * Cout + f * f * Cout * Cout))
    bytes_accessed = int(xs.size * 2 + (w1r.size + w2r.size + w3r.size) * 2
                         + (b1r.size + b2r.size + b3r.size) * 4
                         + Npad * Ho * Wo * Cout * 4)

    kernel = functools.partial(_down2d_kernel, f=f, k_target=256)

    out = pl.pallas_call(
        kernel,
        out_shape=jax.ShapeDtypeStruct((Npad, Ho, Wo, Cout), jnp.float32),
        grid=(Npad // Nb,),
        in_specs=[
            pl.BlockSpec((Nb, Ho, Wo, K1), lambda n: (n, 0, 0, 0)),
            pl.BlockSpec((K1, cmid), lambda n: (0, 0)),
            pl.BlockSpec((1, cmid), lambda n: (0, 0)),
            pl.BlockSpec((f * f * cmid, Cout), lambda n: (0, 0)),
            pl.BlockSpec((1, Cout), lambda n: (0, 0)),
            pl.BlockSpec((f * f * Cout, Cout), lambda n: (0, 0)),
            pl.BlockSpec((1, Cout), lambda n: (0, 0)),
        ],
        out_specs=pl.BlockSpec((Nb, Ho, Wo, Cout), lambda n: (n, 0, 0, 0)),
        scratch_shapes=[
            pltpu.VMEM((Nb, Ho + 2 * fp, Wo + 2 * fp, cmid), jnp.float32),
            pltpu.VMEM((Nb, Ho + 2 * fp, Wo + 2 * fp, Cout), jnp.float32),
        ],
        compiler_params=pltpu.CompilerParams(
            dimension_semantics=("parallel",),
            vmem_limit_bytes=64 * 1024 * 1024,
        ),
        cost_estimate=pl.CostEstimate(
            flops=flops, transcendentals=0, bytes_accessed=bytes_accessed),
    )(xs, w1r, b1r, w2r, b2r, w3r, b3r)

    out = out[:N]                                   # drop batch padding
    return jnp.transpose(out, (0, 3, 1, 2))         # NHWC -> NCHW (module semantics)


def init_params(key, in_channels, out_channels, filter_size):
    """Deterministic kaiming-uniform-ish init (synthetic, not a checkpoint)."""
    def conv_init(k, cout, cin, kh, kw):
        kw_, kb_ = jax.random.split(k)
        fan_in = cin * kh * kw
        bound = 1.0 / jnp.sqrt(fan_in)
        w = jax.random.uniform(kw_, (cout, cin, kh, kw), jnp.float32, -bound, bound)
        b = jax.random.uniform(kb_, (cout,), jnp.float32, -bound, bound)
        return w, b

    k1, k2, k3 = jax.random.split(key, 3)
    w1, b1 = conv_init(k1, in_channels, in_channels, 4, 4)
    w2, b2 = conv_init(k2, out_channels, in_channels, filter_size, filter_size)
    w3, b3 = conv_init(k3, out_channels, out_channels, filter_size, filter_size)
    return {"w1": w1, "b1": b1, "w2": w2, "b2": b2, "w3": w3, "b3": b3}


# ---------------------------------------------------------------------------
# Pure-JAX reference (lax.conv, same bf16-operand / f32-accumulate numerics)
# ---------------------------------------------------------------------------
def _ref_conv_lrelu(x, w, b, stride, pad):
    y = lax.conv_general_dilated(
        x.astype(jnp.bfloat16), w.astype(jnp.bfloat16),
        window_strides=(stride, stride),
        padding=[(pad, pad), (pad, pad)],
        dimension_numbers=("NCHW", "OIHW", "NCHW"),
        preferred_element_type=jnp.float32,
        precision=lax.Precision.HIGHEST,
    )
    y = y + b.reshape(1, -1, 1, 1)
    return jnp.maximum(y, LEAKY_SLOPE * y)


def down2d_ref(x, params, filter_size):
    fp = (filter_size - 1) // 2
    y = _ref_conv_lrelu(x, params["w1"], params["b1"], 2, 1)
    y = _ref_conv_lrelu(y, params["w2"], params["b2"], 1, fp)
    y = _ref_conv_lrelu(y, params["w3"], params["b3"], 1, fp)
    return y


if __name__ == "__main__":
    in_channels, out_channels, filter_size = 4, 8, 3
    N, H, W = 2, 16, 16

    key = jax.random.PRNGKey(0)
    kx, kp = jax.random.split(key)
    x = jax.random.normal(kx, (N, in_channels, H, W), jnp.float32)
    params = init_params(kp, in_channels, out_channels, filter_size)

    fwd = jax.jit(functools.partial(down2d_forward, filter_size=filter_size))
    out = jax.block_until_ready(fwd(x, params))

    assert out.shape == (N, out_channels, H // 2, W // 2), out.shape
    assert out.dtype == jnp.float32

    ref = jax.block_until_ready(down2d_ref(x, params, filter_size))
    max_err = float(jnp.max(jnp.abs(out - ref)))
    assert jnp.allclose(out, ref, rtol=2e-3, atol=2e-3), max_err

    print("KERNEL_OK")
</pallas_src>

<mosaic_0001>
module attributes {stable_mosaic.version = 11 : i64} {
  func.func @_down2d_kernel(%arg0: i32, %arg1: memref<1x8x8x64xbf16, #tpu.memory_space<vmem>>, %arg2: memref<64x4xbf16, #tpu.memory_space<vmem>>, %arg3: memref<1x4xf32, #tpu.memory_space<vmem>>, %arg4: memref<36x8xbf16, #tpu.memory_space<vmem>>, %arg5: memref<1x8xf32, #tpu.memory_space<vmem>>, %arg6: memref<72x8xbf16, #tpu.memory_space<vmem>>, %arg7: memref<1x8xf32, #tpu.memory_space<vmem>>, %arg8: memref<1x8x8x8xf32, #tpu.memory_space<vmem>>, %arg9: memref<1x10x10x4xf32, #tpu.memory_space<vmem>>, %arg10: memref<1x10x10x8xf32, #tpu.memory_space<vmem>>) attributes {dimension_semantics = [#tpu.dimension_semantics<parallel>], iteration_bounds = array<i64: 2>, scalar_prefetch = 0 : i64, scratch_operands = 2 : i64, tpu.core_type = #tpu.core_type<tc>, window_params = [{transform_indices = @transform_0, window_bounds = array<i64: 1, 8, 8, 64>}, {pipeline_mode = #tpu.pipeline_mode<synchronous>, transform_indices = @transform_1, window_bounds = array<i64: 64, 4>}, {pipeline_mode = #tpu.pipeline_mode<synchronous>, transform_indices = @transform_2, window_bounds = array<i64: 1, 4>}, {pipeline_mode = #tpu.pipeline_mode<synchronous>, transform_indices = @transform_3, window_bounds = array<i64: 36, 8>}, {pipeline_mode = #tpu.pipeline_mode<synchronous>, transform_indices = @transform_4, window_bounds = array<i64: 1, 8>}, {pipeline_mode = #tpu.pipeline_mode<synchronous>, transform_indices = @transform_5, window_bounds = array<i64: 72, 8>}, {pipeline_mode = #tpu.pipeline_mode<synchronous>, transform_indices = @transform_6, window_bounds = array<i64: 1, 8>}, {transform_indices = @transform_7, window_bounds = array<i64: 1, 8, 8, 8>}]} {
    %c0 = arith.constant 0 : index
    %c0_0 = arith.constant 0 : index
    %c0_1 = arith.constant 0 : index
    %c0_2 = arith.constant 0 : index
    %0 = vector.load %arg1[%c0, %c0_0, %c0_1, %c0_2] : memref<1x8x8x64xbf16, #tpu.memory_space<vmem>>, vector<1x8x8x64xbf16>
    %1 = vector.shape_cast %0 : vector<1x8x8x64xbf16> to vector<64x64xbf16>
    %c0_3 = arith.constant 0 : index
    %c0_4 = arith.constant 0 : index
    %2 = vector.load %arg2[%c0_3, %c0_4] : memref<64x4xbf16, #tpu.memory_space<vmem>>, vector<64x4xbf16>
    %cst = arith.constant dense<0.000000e+00> : vector<64x4xf32>
    %3 = tpu.matmul %1, %2, %cst {dimension_numbers = #tpu.dot_dimension_numbers<[1], [0], [0], [1], [0, 0, 1, 1], [], []>} : vector<64x64xbf16>, vector<64x4xbf16>, vector<64x4xf32> -> vector<64x4xf32>
    %c0_5 = arith.constant 0 : index
    %c0_6 = arith.constant 0 : index
    %4 = vector.load %arg3[%c0_5, %c0_6] : memref<1x4xf32, #tpu.memory_space<vmem>>, vector<1x4xf32>
    %5 = vector.broadcast %4 : vector<1x4xf32> to vector<64x4xf32>
    %6 = arith.addf %3, %5 : vector<64x4xf32>
    %cst_7 = arith.constant 1.000000e-01 : f32
    %7 = vector.broadcast %cst_7 : f32 to vector<64x4xf32>
    %8 = arith.mulf %7, %6 : vector<64x4xf32>
    %9 = arith.maximumf %6, %8 : vector<64x4xf32>
    %cst_8 = arith.constant 0.000000e+00 : f32
    %10 = vector.broadcast %cst_8 : f32 to vector<1x10x10x4xf32>
    %c0_9 = arith.constant 0 : index
    %c0_10 = arith.constant 0 : index
    %c0_11 = arith.constant 0 : index
    %c0_12 = arith.constant 0 : index
    %11 = vector.load %arg9[%c0_9, %c0_10, %c0_11, %c0_12] : memref<1x10x10x4xf32, #tpu.memory_space<vmem>>, vector<1x10x10x4xf32>
    tpu.vector_store %arg9[%c0_9, %c0_10, %c0_11, %c0_12], %10 {strides = array<i32>} : memref<1x10x10x4xf32, #tpu.memory_space<vmem>>, vector<1x10x10x4xf32>,
    %12 = vector.shape_cast %9 : vector<64x4xf32> to vector<1x8x8x4xf32>
    %c0_13 = arith.constant 0 : index
    %c1 = arith.constant 1 : index
    %c1_14 = arith.constant 1 : index
    %c0_15 = arith.constant 0 : index
    %13 = vector.load %arg9[%c0_13, %c1, %c1_14, %c0_15] : memref<1x10x10x4xf32, #tpu.memory_space<vmem>>, vector<1x8x8x4xf32>
    tpu.vector_store %arg9[%c0_13, %c1, %c1_14, %c0_15], %12 {strides = array<i32>} : memref<1x10x10x4xf32, #tpu.memory_space<vmem>>, vector<1x8x8x4xf32>,
    %c0_16 = arith.constant 0 : index
    %c0_17 = arith.constant 0 : index
    %c0_18 = arith.constant 0 : index
    %c0_19 = arith.constant 0 : index
    %14 = vector.load %arg9[%c0_16, %c0_17, %c0_18, %c0_19] : memref<1x10x10x4xf32, #tpu.memory_space<vmem>>, vector<1x8x8x4xf32>
    %15 = arith.truncf %14 : vector<1x8x8x4xf32> to vector<1x8x8x4xbf16>
    %16 = vector.shape_cast %15 : vector<1x8x8x4xbf16> to vector<64x4xbf16>
    %c0_20 = arith.constant 0 : index
    %c0_21 = arith.constant 0 : index
    %c1_22 = arith.constant 1 : index
    %c0_23 = arith.constant 0 : index
    %17 = vector.load %arg9[%c0_20, %c0_21, %c1_22, %c0_23] : memref<1x10x10x4xf32, #tpu.memory_space<vmem>>, vector<1x8x8x4xf32>
    %18 = arith.truncf %17 : vector<1x8x8x4xf32> to vector<1x8x8x4xbf16>
    %19 = vector.shape_cast %18 : vector<1x8x8x4xbf16> to vector<64x4xbf16>
    %c0_24 = arith.constant 0 : index
    %c0_25 = arith.constant 0 : index
    %c2 = arith.constant 2 : index
    %c0_26 = arith.constant 0 : index
    %20 = vector.load %arg9[%c0_24, %c0_25, %c2, %c0_26] : memref<1x10x10x4xf32, #tpu.memory_space<vmem>>, vector<1x8x8x4xf32>
    %21 = arith.truncf %20 : vector<1x8x8x4xf32> to vector<1x8x8x4xbf16>
    %22 = vector.shape_cast %21 : vector<1x8x8x4xbf16> to vector<64x4xbf16>
    %c0_27 = arith.constant 0 : index
    %c1_28 = arith.constant 1 : index
    %c0_29 = arith.constant 0 : index
    %c0_30 = arith.constant 0 : index
    %23 = vector.load %arg9[%c0_27, %c1_28, %c0_29, %c0_30] : memref<1x10x10x4xf32, #tpu.memory_space<vmem>>, vector<1x8x8x4xf32>
    %24 = arith.truncf %23 : vector<1x8x8x4xf32> to vector<1x8x8x4xbf16>
    %25 = vector.shape_cast %24 : vector<1x8x8x4xbf16> to vector<64x4xbf16>
    %c0_31 = arith.constant 0 : index
    %c1_32 = arith.constant 1 : index
    %c1_33 = arith.constant 1 : index
    %c0_34 = arith.constant 0 : index
    %26 = vector.load %arg9[%c0_31, %c1_32, %c1_33, %c0_34] : memref<1x10x10x4xf32, #tpu.memory_space<vmem>>, vector<1x8x8x4xf32>
    %27 = arith.truncf %26 : vector<1x8x8x4xf32> to vector<1x8x8x4xbf16>
    %28 = vector.shape_cast %27 : vector<1x8x8x4xbf16> to vector<64x4xbf16>
    %c0_35 = arith.constant 0 : index
    %c1_36 = arith.constant 1 : index
    %c2_37 = arith.constant 2 : index
    %c0_38 = arith.constant 0 : index
    %29 = vector.load %arg9[%c0_35, %c1_36, %c2_37, %c0_38] : memref<1x10x10x4xf32, #tpu.memory_space<vmem>>, vector<1x8x8x4xf32>
    %30 = arith.truncf %29 : vector<1x8x8x4xf32> to vector<1x8x8x4xbf16>
    %31 = vector.shape_cast %30 : vector<1x8x8x4xbf16> to vector<64x4xbf16>
    %c0_39 = arith.constant 0 : index
    %c2_40 = arith.constant 2 : index
    %c0_41 = arith.constant 0 : index
    %c0_42 = arith.constant 0 : index
    %32 = vector.load %arg9[%c0_39, %c2_40, %c0_41, %c0_42] : memref<1x10x10x4xf32, #tpu.memory_space<vmem>>, vector<1x8x8x4xf32>
    %33 = arith.truncf %32 : vector<1x8x8x4xf32> to vector<1x8x8x4xbf16>
    %34 = vector.shape_cast %33 : vector<1x8x8x4xbf16> to vector<64x4xbf16>
    %c0_43 = arith.constant 0 : index
    %c2_44 = arith.constant 2 : index
    %c1_45 = arith.constant 1 : index
    %c0_46 = arith.constant 0 : index
    %35 = vector.load %arg9[%c0_43, %c2_44, %c1_45, %c0_46] : memref<1x10x10x4xf32, #tpu.memory_space<vmem>>, vector<1x8x8x4xf32>
    %36 = arith.truncf %35 : vector<1x8x8x4xf32> to vector<1x8x8x4xbf16>
    %37 = vector.shape_cast %36 : vector<1x8x8x4xbf16> to vector<64x4xbf16>
    %c0_47 = arith.constant 0 : index
    %c2_48 = arith.constant 2 : index
    %c2_49 = arith.constant 2 : index
    %c0_50 = arith.constant 0 : index
    %38 = vector.load %arg9[%c0_47, %c2_48, %c2_49, %c0_50] : memref<1x10x10x4xf32, #tpu.memory_space<vmem>>, vector<1x8x8x4xf32>
    %39 = arith.truncf %38 : vector<1x8x8x4xf32> to vector<1x8x8x4xbf16>
    %40 = vector.shape_cast %39 : vector<1x8x8x4xbf16> to vector<64x4xbf16>
    %41 = tpu.concatenate %16, %19, %22, %25, %28, %31, %34, %37, %40 in 1 : vector<64x4xbf16>, vector<64x4xbf16>, vector<64x4xbf16>, vector<64x4xbf16>, vector<64x4xbf16>, vector<64x4xbf16>, vector<64x4xbf16>, vector<64x4xbf16>, vector<64x4xbf16> -> vector<64x36xbf16>
    %c0_51 = arith.constant 0 : index
    %c0_52 = arith.constant 0 : index
    %42 = vector.load %arg4[%c0_51, %c0_52] : memref<36x8xbf16, #tpu.memory_space<vmem>>, vector<36x8xbf16>
    %cst_53 = arith.constant dense<0.000000e+00> : vector<64x8xf32>
    %43 = tpu.matmul %41, %42, %cst_53 {dimension_numbers = #tpu.dot_dimension_numbers<[1], [0], [0], [1], [0, 0, 1, 1], [], []>} : vector<64x36xbf16>, vector<36x8xbf16>, vector<64x8xf32> -> vector<64x8xf32>
    %c0_54 = arith.constant 0 : index
    %c0_55 = arith.constant 0 : index
    %44 = vector.load %arg5[%c0_54, %c0_55] : memref<1x8xf32, #tpu.memory_space<vmem>>, vector<1x8xf32>
    %45 = vector.broadcast %44 : vector<1x8xf32> to vector<64x8xf32>
    %46 = arith.addf %43, %45 : vector<64x8xf32>
    %cst_56 = arith.constant 1.000000e-01 : f32
    %47 = vector.broadcast %cst_56 : f32 to vector<64x8xf32>
    %48 = arith.mulf %47, %46 : vector<64x8xf32>
    %49 = arith.maximumf %46, %48 : vector<64x8xf32>
    %cst_57 = arith.constant 0.000000e+00 : f32
    %50 = vector.broadcast %cst_57 : f32 to vector<1x10x10x8xf32>
    %c0_58 = arith.constant 0 : index
    %c0_59 = arith.constant 0 : index
    %c0_60 = arith.constant 0 : index
    %c0_61 = arith.constant 0 : index
    %51 = vector.load %arg10[%c0_58, %c0_59, %c0_60, %c0_61] : memref<1x10x10x8xf32, #tpu.memory_space<vmem>>, vector<1x10x10x8xf32>
    tpu.vector_store %arg10[%c0_58, %c0_59, %c0_60, %c0_61], %50 {strides = array<i32>} : memref<1x10x10x8xf32, #tpu.memory_space<vmem>>, vector<1x10x10x8xf32>,
    %52 = vector.shape_cast %49 : vector<64x8xf32> to vector<1x8x8x8xf32>
    %c0_62 = arith.constant 0 : index
    %c1_63 = arith.constant 1 : index
    %c1_64 = arith.constant 1 : index
    %c0_65 = arith.constant 0 : index
    %53 = vector.load %arg10[%c0_62, %c1_63, %c1_64, %c0_65] : memref<1x10x10x8xf32, #tpu.memory_space<vmem>>, vector<1x8x8x8xf32>
    tpu.vector_store %arg10[%c0_62, %c1_63, %c1_64, %c0_65], %52 {strides = array<i32>} : memref<1x10x10x8xf32, #tpu.memory_space<vmem>>, vector<1x8x8x8xf32>,
    %c0_66 = arith.constant 0 : index
    %c0_67 = arith.constant 0 : index
    %c0_68 = arith.constant 0 : index
    %c0_69 = arith.constant 0 : index
    %54 = vector.load %arg10[%c0_66, %c0_67, %c0_68, %c0_69] : memref<1x10x10x8xf32, #tpu.memory_space<vmem>>, vector<1x8x8x8xf32>
    %55 = arith.truncf %54 : vector<1x8x8x8xf32> to vector<1x8x8x8xbf16>
    %56 = vector.shape_cast %55 : vector<1x8x8x8xbf16> to vector<64x8xbf16>
    %c0_70 = arith.constant 0 : index
    %c0_71 = arith.constant 0 : index
    %c1_72 = arith.constant 1 : index
    %c0_73 = arith.constant 0 : index
    %57 = vector.load %arg10[%c0_70, %c0_71, %c1_72, %c0_73] : memref<1x10x10x8xf32, #tpu.memory_space<vmem>>, vector<1x8x8x8xf32>
    %58 = arith.truncf %57 : vector<1x8x8x8xf32> to vector<1x8x8x8xbf16>
    %59 = vector.shape_cast %58 : vector<1x8x8x8xbf16> to vector<64x8xbf16>
    %c0_74 = arith.constant 0 : index
    %c0_75 = arith.constant 0 : index
    %c2_76 = arith.constant 2 : index
    %c0_77 = arith.constant 0 : index
    %60 = vector.load %arg10[%c0_74, %c0_75, %c2_76, %c0_77] : memref<1x10x10x8xf32, #tpu.memory_space<vmem>>, vector<1x8x8x8xf32>
    %61 = arith.truncf %60 : vector<1x8x8x8xf32> to vector<1x8x8x8xbf16>
    %62 = vector.shape_cast %61 : vector<1x8x8x8xbf16> to vector<64x8xbf16>
    %c0_78 = arith.constant 0 : index
    %c1_79 = arith.constant 1 : index
    %c0_80 = arith.constant 0 : index
    %c0_81 = arith.constant 0 : index
    %63 = vector.load %arg10[%c0_78, %c1_79, %c0_80, %c0_81] : memref<1x10x10x8xf32, #tpu.memory_space<vmem>>, vector<1x8x8x8xf32>
    %64 = arith.truncf %63 : vector<1x8x8x8xf32> to vector<1x8x8x8xbf16>
    %65 = vector.shape_cast %64 : vector<1x8x8x8xbf16> to vector<64x8xbf16>
    %c0_82 = arith.constant 0 : index
    %c1_83 = arith.constant 1 : index
    %c1_84 = arith.constant 1 : index
    %c0_85 = arith.constant 0 : index
    %66 = vector.load %arg10[%c0_82, %c1_83, %c1_84, %c0_85] : memref<1x10x10x8xf32, #tpu.memory_space<vmem>>, vector<1x8x8x8xf32>
    %67 = arith.truncf %66 : vector<1x8x8x8xf32> to vector<1x8x8x8xbf16>
    %68 = vector.shape_cast %67 : vector<1x8x8x8xbf16> to vector<64x8xbf16>
    %c0_86 = arith.constant 0 : index
    %c1_87 = arith.constant 1 : index
    %c2_88 = arith.constant 2 : index
    %c0_89 = arith.constant 0 : index
    %69 = vector.load %arg10[%c0_86, %c1_87, %c2_88, %c0_89] : memref<1x10x10x8xf32, #tpu.memory_space<vmem>>, vector<1x8x8x8xf32>
    %70 = arith.truncf %69 : vector<1x8x8x8xf32> to vector<1x8x8x8xbf16>
    %71 = vector.shape_cast %70 : vector<1x8x8x8xbf16> to vector<64x8xbf16>
    %c0_90 = arith.constant 0 : index
    %c2_91 = arith.constant 2 : index
    %c0_92 = arith.constant 0 : index
    %c0_93 = arith.constant 0 : index
    %72 = vector.load %arg10[%c0_90, %c2_91, %c0_92, %c0_93] : memref<1x10x10x8xf32, #tpu.memory_space<vmem>>, vector<1x8x8x8xf32>
    %73 = arith.truncf %72 : vector<1x8x8x8xf32> to vector<1x8x8x8xbf16>
    %74 = vector.shape_cast %73 : vector<1x8x8x8xbf16> to vector<64x8xbf16>
    %c0_94 = arith.constant 0 : index
    %c2_95 = arith.constant 2 : index
    %c1_96 = arith.constant 1 : index
    %c0_97 = arith.constant 0 : index
    %75 = vector.load %arg10[%c0_94, %c2_95, %c1_96, %c0_97] : memref<1x10x10x8xf32, #tpu.memory_space<vmem>>, vector<1x8x8x8xf32>
    %76 = arith.truncf %75 : vector<1x8x8x8xf32> to vector<1x8x8x8xbf16>
    %77 = vector.shape_cast %76 : vector<1x8x8x8xbf16> to vector<64x8xbf16>
    %c0_98 = arith.constant 0 : index
    %c2_99 = arith.constant 2 : index
    %c2_100 = arith.constant 2 : index
    %c0_101 = arith.constant 0 : index
    %78 = vector.load %arg10[%c0_98, %c2_99, %c2_100, %c0_101] : memref<1x10x10x8xf32, #tpu.memory_space<vmem>>, vector<1x8x8x8xf32>
    %79 = arith.truncf %78 : vector<1x8x8x8xf32> to vector<1x8x8x8xbf16>
    %80 = vector.shape_cast %79 : vector<1x8x8x8xbf16> to vector<64x8xbf16>
    %81 = tpu.concatenate %56, %59, %62, %65, %68, %71, %74, %77, %80 in 1 : vector<64x8xbf16>, vector<64x8xbf16>, vector<64x8xbf16>, vector<64x8xbf16>, vector<64x8xbf16>, vector<64x8xbf16>, vector<64x8xbf16>, vector<64x8xbf16>, vector<64x8xbf16> -> vector<64x72xbf16>
    %c0_102 = arith.constant 0 : index
    %c0_103 = arith.constant 0 : index
    %82 = vector.load %arg6[%c0_102, %c0_103] : memref<72x8xbf16, #tpu.memory_space<vmem>>, vector<72x8xbf16>
    %cst_104 = arith.constant dense<0.000000e+00> : vector<64x8xf32>
    %83 = tpu.matmul %81, %82, %cst_104 {dimension_numbers = #tpu.dot_dimension_numbers<[1], [0], [0], [1], [0, 0, 1, 1], [], []>} : vector<64x72xbf16>, vector<72x8xbf16>, vector<64x8xf32> -> vector<64x8xf32>
    %c0_105 = arith.constant 0 : index
    %c0_106 = arith.constant 0 : index
    %84 = vector.load %arg7[%c0_105, %c0_106] : memref<1x8xf32, #tpu.memory_space<vmem>>, vector<1x8xf32>
    %85 = vector.broadcast %84 : vector<1x8xf32> to vector<64x8xf32>
    %86 = arith.addf %83, %85 : vector<64x8xf32>
    %cst_107 = arith.constant 1.000000e-01 : f32
    %87 = vector.broadcast %cst_107 : f32 to vector<64x8xf32>
    %88 = arith.mulf %87, %86 : vector<64x8xf32>
    %89 = arith.maximumf %86, %88 : vector<64x8xf32>
    %90 = vector.shape_cast %89 : vector<64x8xf32> to vector<1x8x8x8xf32>
    %c0_108 = arith.constant 0 : index
    %c0_109 = arith.constant 0 : index
    %c0_110 = arith.constant 0 : index
    %c0_111 = arith.constant 0 : index
    %91 = vector.load %arg8[%c0_108, %c0_109, %c0_110, %c0_111] : memref<1x8x8x8xf32, #tpu.memory_space<vmem>>, vector<1x8x8x8xf32>
    tpu.vector_store %arg8[%c0_108, %c0_109, %c0_110, %c0_111], %90 {strides = array<i32>} : memref<1x8x8x8xf32, #tpu.memory_space<vmem>>, vector<1x8x8x8xf32>,
    return
  }
  func.func @transform_0(%arg0: i32) -> (i32, i32, i32, i32) {
    %c0_i32 = arith.constant 0 : i32
    %c0_i32_0 = arith.constant 0 : i32
    %c0_i32_1 = arith.constant 0 : i32
    %c0_i32_2 = arith.constant 0 : i32
    return %arg0, %c0_i32, %c0_i32_0, %c0_i32_1 : i32, i32, i32, i32
  }
  func.func @transform_1(%arg0: i32) -> (i32, i32) {
    %c0_i32 = arith.constant 0 : i32
    %c0_i32_0 = arith.constant 0 : i32
    %c0_i32_1 = arith.constant 0 : i32
    return %c0_i32, %c0_i32_0 : i32, i32
  }
  func.func @transform_2(%arg0: i32) -> (i32, i32) {
    %c0_i32 = arith.constant 0 : i32
    %c0_i32_0 = arith.constant 0 : i32
    %c0_i32_1 = arith.constant 0 : i32
    return %c0_i32, %c0_i32_0 : i32, i32
  }
  func.func @transform_3(%arg0: i32) -> (i32, i32) {
    %c0_i32 = arith.constant 0 : i32
    %c0_i32_0 = arith.constant 0 : i32
    %c0_i32_1 = arith.constant 0 : i32
    return %c0_i32, %c0_i32_0 : i32, i32
  }
  func.func @transform_4(%arg0: i32) -> (i32, i32) {
    %c0_i32 = arith.constant 0 : i32
    %c0_i32_0 = arith.constant 0 : i32
    %c0_i32_1 = arith.constant 0 : i32
    return %c0_i32, %c0_i32_0 : i32, i32
  }
  func.func @transform_5(%arg0: i32) -> (i32, i32) {
    %c0_i32 = arith.constant 0 : i32
    %c0_i32_0 = arith.constant 0 : i32
    %c0_i32_1 = arith.constant 0 : i32
    return %c0_i32, %c0_i32_0 : i32, i32
  }
  func.func @transform_6(%arg0: i32) -> (i32, i32) {
    %c0_i32 = arith.constant 0 : i32
    %c0_i32_0 = arith.constant 0 : i32
    %c0_i32_1 = arith.constant 0 : i32
    return %c0_i32, %c0_i32_0 : i32, i32
  }
  func.func @transform_7(%arg0: i32) -> (i32, i32, i32, i32) {
    %c0_i32 = arith.constant 0 : i32
    %c0_i32_0 = arith.constant 0 : i32
    %c0_i32_1 = arith.constant 0 : i32
    %c0_i32_2 = arith.constant 0 : i32
    return %arg0, %c0_i32, %c0_i32_0, %c0_i32_1 : i32, i32, i32, i32
  }
}

</mosaic_0001>

<bundles_post_ra>
// kernel: down2d_forward.1
= control target key start
LH: loop header
LB: loop body
LE: loop exit
PB: predicated region body
PF: predicated region fallthrough
CT: control target
= control target key end

     0   :  { %s2118_s24 = smov 0   ;;  %s2484_s0 = inlined_call_operand.vmem [shape: bf16[2,8,8,64], index: 0, kind: input, shape index: {}]   ;;  %s2485_s1 = inlined_call_operand.vmem [shape: bf16[64,4], index: 1, kind: input, shape index: {}]   ;;  %s2486_s2 = inlined_call_operand.vmem [shape: f32[1,4], index: 2, kind: input, shape index: {}]   ;;  %s2487_s3 = inlined_call_operand.vmem [shape: bf16[36,8], index: 3, kind: input, shape index: {}]   ;;  %s2488_s4 = inlined_call_operand.vmem [shape: f32[1,8], index: 4, kind: input, shape index: {}]   ;;  %s2489_s5 = inlined_call_operand.vmem [shape: bf16[72,8], index: 5, kind: input, shape index: {}]   ;;  %s2490_s6 = inlined_call_operand.vmem [shape: f32[1,8], index: 6, kind: input, shape index: {}]   ;;  %s2491_s7 = inlined_call_operand.vmem [shape: f32[2,8,8,8], index: 7, kind: output, shape index: {}]  }
   0x1 LB: > { %s1747_s25 = sadd.s32 4294967295, %s2063_s24   ;;  %p1751_p0 = scmp.ge.s32.totalorder %s2063_s24, 1  ;;  %s2063_s24 = sphi %s2118_s24, %s17_s24  }
   0x2   : > { %p237_p1 = scmp.lt.s32.totalorder %s2063_s24, 3 }
   0x4   : > { %p238_p2 = pnand %p1751_p0, %p237_p1 }
   0x5   : > { %p269_p3 = scmp.lt.s32.totalorder (!%p238_p2), %s1747_s25, 1  ;;  %s2066_s17 = smov (!%p238_p2), 8  }
   0x6   : > { %241 = sbr.rel (%p238_p2) target bundleno = 1010 (0x3f2), region = 48  ;;  %s2067_s18 = smov (!%p238_p2), 4  }
   0x7   : > { %s2068_s19 = smov (!%p238_p2), 12   ;;  %s2069_s20 = smov (!%p238_p2), 16  }
   0x8   : > { %s2070_s27 = smov (!%p238_p2), 20   ;;  %s2071_s30 = smov (!%p238_p2), 24  }
   0x9   : > { %s2072_s8 = smov (!%p238_p2), 28   ;;  %s2075_s23 = smov (!%p238_p2), 48  }
   0xa   : > { %s2076_s28 = smov (!%p238_p2), 56   ;;  %s2077_s29 = smov (!%p238_p2), 64  }
   0xb   : > { %v2041_v0 = vld [vmem:[%s2485_s1 + $0x18] sm:$0xff]   ;;  %v2042_v1 = vld [vmem:[%s2485_s1 + $0x10] sm:$0xff]   ;;  %s2493_s25 = smov (!%p269_p3, %s1747_s25), 1  ;;  %vm347_vm0 = vcmask 523264   ;;  %v2043_v2 = vld [vmem:[%s2485_s1 + $0x8] sm:$0xff]   ;;  %vm441_vm1 = vcmask 31744  }
   0xc   : > { %1959 = vmatprep.subr.bf16.mxu0 %v2041_v0  ;;  %s1861_s9 = sshll.u32 %s2493_s25, 5  ;;  %v2044_v4 = vld [vmem:[%s2485_s1] sm:$0xff]   ;;  %vm443_vm2 = vcmask 25600   ;;  %v2065_v8 = vmov 0.0   ;;  %vm873_vm3 = vcmask 64512   ;;  %vm972_vm4 = vcmask 1041408  }
   0xd   : > { %1960 = vmatpush3.bf16.msra.mxu0 %v2041_v0  ;;  %s273_s12 = scalar_lea.vmem %s2484_s0, %s1861_s9  ;;  %449 = vst.msk [vmem:[#allocation2 + $0x30] sm:$0xff] %vm441_vm1, %v2065_v8  ;;  %442 = vst.msk [vmem:[#allocation2] sm:$0xff] %vm441_vm1, %v2065_v8  ;;  %v1756_v9 = vld [vmem:[%s2486_s2] ss:$0 sm:$0xff]  ;;  %s2073_s9 = smov 32   ;;  %vm882_vm5 = vcmask 97280  }
   0xe   : > { %1961 = vmatprep.subr.bf16.mxu0 %v2042_v1  ;;  %v2045_v3 = vld [vmem:[%s273_s12] sm:$0xff]   ;;  %v2046_v5 = vld [vmem:[%s273_s12 + $0x8] sm:$0xff]   ;;  %v2047_v6 = vld [vmem:[%s273_s12 + $0x10] sm:$0xff]   ;;  %450 = vst.msk [vmem:[#allocation2 + $0x38] sm:$0x3] %vm443_vm2, %v2065_v8  ;;  %vm891_vm6 = vcmask 130048  }
   0xf   : > { %1967 = vmatprep.mubr.msk.bf16.mxu0 %vm347_vm0, %v2045_v3  ;;  %v2048_v7 = vld [vmem:[%s273_s12 + $0x18] sm:$0xff]   ;;  %444 = vst.msk [vmem:[#allocation2 + $0x8] sm:$0x3] %vm443_vm2, %v2065_v8  ;;  %446 = vst.msk [vmem:[#allocation2 + $0x18] sm:$0x3] %vm443_vm2, %v2065_v8  ;;  %vm900_vm7 = vcmask 162816  }
  0x10   : > { %445 = vst.msk [vmem:[#allocation2 + $0x10] sm:$0xff] %vm441_vm1, %v2065_v8  ;;  %447 = vst.msk [vmem:[#allocation2 + $0x20] sm:$0xff] %vm441_vm1, %v2065_v8  ;;  %v2049_v60 = vld [vmem:[%s2487_s3 + $0x10] ss:$0 sps:$4 sm:$0x33]   ;;  %vm909_vm8 = vcmask 195584  }
  0x11   : > { %1962 = vmatpush3.bf16.msra.mxu0 %v2042_v1  ;;  %448 = vst.msk [vmem:[#allocation2 + $0x28] sm:$0x3] %vm443_vm2, %v2065_v8  ;;  %452 = vst.msk [vmem:[#allocation2 + $0x48] sm:$0x3] %vm443_vm2, %v2065_v8  ;;  %2017 = vmatprep.subr.msk.bf16.mxu1 %vm972_vm4, %v2049_v60  ;;  %v974_v1 = vsel %vm972_vm4, %v2049_v60, 0  ;;  %vm918_vm9 = vcmask 228352  }
  0x12   : > { %1963 = vmatprep.subr.bf16.mxu0 %v2043_v2  ;;  %451 = vst.msk [vmem:[#allocation2 + $0x40] sm:$0xff] %vm441_vm1, %v2065_v8  ;;  %453 = vst.msk [vmem:[#allocation2 + $0x50] sm:$0xff] %vm441_vm1, %v2065_v8  ;;  %1976 = vmatpush3.bf16.msra.mxu1 %v974_v1  ;;  %vm927_vm10 = vcmask 261120   ;;  %vm963_vm11 = vcmask 293888   ;;  %vm1058_vm12 = vcmask 58368   ;;  %s2074_s12 = smov 40  }
  0x13   : > { %454 = vst.msk [vmem:[#allocation2 + $0x58] sm:$0x3] %vm443_vm2, %v2065_v8  ;;  %456 = vst.msk [vmem:[#allocation2 + $0x68] sm:$0x3] %vm443_vm2, %v2065_v8  ;;  %vm1599_vm13 = vcmask 1043456   ;;  %vm1521_vm14 = vcmask 392192  }
  0x14   : > { %455 = vst.msk [vmem:[#allocation2 + $0x60] sm:$0xff] %vm441_vm1, %v2065_v8  ;;  %457 = vst.msk [vmem:[#allocation2 + $0x70] sm:$0xff] %vm441_vm1, %v2065_v8  ;;  %vm1512_vm15 = vcmask 326656  }
  0x15   : > { %1964 = vmatpush3.bf16.msra.mxu0 %v2043_v2  ;;  %458 = vst.msk [vmem:[#allocation2 + $0x78] sm:$0x3] %vm443_vm2, %v2065_v8  ;;  %460 = vst.msk [vmem:[#allocation2 + $0x88] sm:$0x3] %vm443_vm2, %v2065_v8  ;;  %v2050_v2 = vld [vmem:[%s2487_s3 + $0x8] sm:$0xff]  }
  0x16   : > { %1965 = vmatprep.subr.bf16.mxu0 %v2044_v4  ;;  %459 = vst.msk [vmem:[#allocation2 + $0x80] sm:$0xff] %vm441_vm1, %v2065_v8  ;;  %461 = vst.msk [vmem:[#allocation2 + $0x90] sm:$0xff] %vm441_vm1, %v2065_v8  ;;  %v504_v36 = vld [vmem:[#allocation2 + $0x2] sm:$0xff]  ;;  %1977 = vmatprep.subr.bf16.mxu1 %v2050_v2 }
  0x17   : > { %462 = vst.msk [vmem:[#allocation2 + $0x98] sm:$0x3] %vm443_vm2, %v2065_v8  ;;  %v488_v37 = vld [vmem:[#allocation2 + $0x1] sm:$0xff]  ;;  %1978 = vmatpush3.bf16.msra.mxu1 %v2050_v2  ;;  %vm1590_vm2 = vcmask 588800  }
  0x18   : > { %1057 = vst.msk [vmem:[#allocation3] sm:$0xff] %vm873_vm3, %v2065_v8  ;;  %1060 = vst.msk [vmem:[#allocation3 + $0x10] sm:$0xff] %vm873_vm3, %v2065_v8 }
  0x19   : > { %1966 = vmatpush3.bf16.msra.mxu0 %v2044_v4  ;;  %1062 = vst.msk [vmem:[#allocation3 + $0x20] sm:$0xff] %vm873_vm3, %v2065_v8  ;;  %1064 = vst.msk [vmem:[#allocation3 + $0x30] sm:$0xff] %vm873_vm3, %v2065_v8 }
  0x1a   : > { %1066 = vst.msk [vmem:[#allocation3 + $0x40] sm:$0xff] %vm873_vm3, %v2065_v8  ;;  %1068 = vst.msk [vmem:[#allocation3 + $0x50] sm:$0xff] %vm873_vm3, %v2065_v8 }
  0x1b   : > { %1070 = vst.msk [vmem:[#allocation3 + $0x60] sm:$0xff] %vm873_vm3, %v2065_v8  ;;  %1072 = vst.msk [vmem:[#allocation3 + $0x70] sm:$0xff] %vm873_vm3, %v2065_v8 }
  0x1c   : > { %1968 = vmatmul.mubr.msk.bf16.vlgmr.msra.gmra.mxu0 %vm347_vm0, %v2046_v5  ;;  %1074 = vst.msk [vmem:[#allocation3 + $0x80] sm:$0xff] %vm873_vm3, %v2065_v8  ;;  %1076 = vst.msk [vmem:[#allocation3 + $0x90] sm:$0xff] %vm873_vm3, %v2065_v8 }
  0x1d   : > { %1971 = vmatprep.mubr.msk.bf16.mxu0 %vm347_vm0, %v2047_v6  ;;  %v2051_v6 = vld [vmem:[%s2487_s3] sm:$0xff]   ;;  %1065 = vst.msk [vmem:[#allocation3 + $0x38] sm:$0x3] %vm1058_vm12, %v2065_v8  ;;  %1059 = vst.msk [vmem:[#allocation3 + $0x8] sm:$0x3] %vm1058_vm12, %v2065_v8 }
  0x1e   : > { %1979 = vmatprep.subr.bf16.mxu1 %v2051_v6  ;;  %1061 = vst.msk [vmem:[#allocation3 + $0x18] sm:$0x3] %vm1058_vm12, %v2065_v8  ;;  %1063 = vst.msk [vmem:[#allocation3 + $0x28] sm:$0x3] %vm1058_vm12, %v2065_v8 }
  0x1f   : > { %1980 = vmatpush3.bf16.msra.mxu1 %v2051_v6  ;;  %1067 = vst.msk [vmem:[#allocation3 + $0x48] sm:$0x3] %vm1058_vm12, %v2065_v8  ;;  %1069 = vst.msk [vmem:[#allocation3 + $0x58] sm:$0x3] %vm1058_vm12, %v2065_v8 }
  0x20   : > { %1071 = vst.msk [vmem:[#allocation3 + $0x68] sm:$0x3] %vm1058_vm12, %v2065_v8  ;;  %1073 = vst.msk [vmem:[#allocation3 + $0x78] sm:$0x3] %vm1058_vm12, %v2065_v8 }
  0x21   : > { %1075 = vst.msk [vmem:[#allocation3 + $0x88] sm:$0x3] %vm1058_vm12, %v2065_v8  ;;  %1077 = vst.msk [vmem:[#allocation3 + $0x98] sm:$0x3] %vm1058_vm12, %v2065_v8 }
  0x24   : > { %1972 = vmatmul.mubr.msk.bf16.gmra.mxu0 %vm347_vm0, %v2048_v7 }
  0xdc   : > { %v1969_v10 = vpop.f32.mrf.mxu0 }
  0xdd   : > { %v403_v11 = vadd.f32 %v1969_v10, %v1756_v9 }
  0xde   : > { %v394_v12 = vpop.f32.mrf.mxu0 }
  0xdf   : > { %v427_v13 = vmul.f32 0.1, %v403_v11  ;;  %v395_v14 = vadd.f32 %v1756_v9, %v394_v12 }
  0xe0   : > { %v1970_v15 = vpop.f32.mrf.mxu0 }
  0xe1   : > { %v435_v16 = vmax.f32 %v403_v11, %v427_v13  ;;  %v425_v17 = vmul.f32 0.1, %v395_v14  ;;  %v406_v18 = vadd.f32 %v1970_v15, %v1756_v9 }
  0xe2   : > { %v397_v19 = vpop.f32.mrf.mxu0 }
  0xe3   : > { %466 = vst.msk [vmem:[#allocation2 + $0x31] sm:$0xff] %vm441_vm1, %v435_v16  ;;  %v433_v20 = vmax.f32 %v395_v14, %v425_v17  ;;  %v428_v21 = vmul.f32 0.1, %v406_v18  ;;  %v398_v22 = vadd.f32 %v1756_v9, %v397_v19 }
  0xe4   : > { %v1973_v23 = vpop.f32.mrf.mxu0 }
  0xe5   : > { %464 = vst.msk [vmem:[#allocation2 + $0x11] sm:$0xff] %vm441_vm1, %v433_v20  ;;  %v436_v24 = vmax.f32 %v406_v18, %v428_v21  ;;  %v426_v25 = vmul.f32 0.1, %v398_v22  ;;  %v419_v26 = vadd.f32 %v1973_v23, %v1756_v9 }
  0xe6   : > { %v410_v27 = vpop.f32.mrf.mxu0 }
  0xe7   : > { %467 = vst.msk [vmem:[#allocation2 + $0x41] sm:$0xff] %vm441_vm1, %v436_v24  ;;  %v434_v28 = vmax.f32 %v398_v22, %v426_v25  ;;  %v431_v29 = vmul.f32 0.1, %v419_v26  ;;  %v411_v30 = vadd.f32 %v1756_v9, %v410_v27  ;;  %v576_v25 = vld [vmem:[#allocation2 + $0x90] sm:$0xff] }
  0xe8   : > { %v1974_v31 = vpop.f32.mrf.mxu0 }
  0xe9   : > { %465 = vst.msk [vmem:[#allocation2 + $0x21] sm:$0xff] %vm441_vm1, %v434_v28  ;;  %v439_v32 = vmax.f32 %v419_v26, %v431_v29  ;;  %v429_v33 = vmul.f32 0.1, %v411_v30  ;;  %v422_v34 = vadd.f32 %v1974_v31, %v1756_v9 }
  0xea   : > { %v413_v35 = vpop.f32.mrf.mxu0  ;;  %v522_v49 = vld [vmem:[#allocation2 + $0x30] sm:$0xff] }
  0xeb   : > { %470 = vst.msk [vmem:[#allocation2 + $0x71] sm:$0xff] %vm441_vm1, %v439_v32  ;;  %v437_v38 = vmax.f32 %v411_v30, %v429_v33  ;;  %v432_v39 = vmul.f32 0.1, %v422_v34  ;;  %v414_v40 = vadd.f32 %v1756_v9, %v413_v35  ;;  %v491_v51 = vld [vmem:[#allocation2 + $0x31] sm:$0xff] }
  0xec   : > { %v505_v41 = vld [vmem:[#allocation2 + $0x12] sm:$0xff] }
  0xed   : > { %v489_v42 = vld [vmem:[#allocation2 + $0x11] sm:$0xff]  ;;  %468 = vst.msk [vmem:[#allocation2 + $0x51] sm:$0xff] %vm441_vm1, %v437_v38  ;;  %v440_v43 = vmax.f32 %v422_v34, %v432_v39  ;;  %v430_v44 = vmul.f32 0.1, %v414_v40  ;;  %v1871_v45 = vpack.c.bf16 %v505_v41, %v504_v36 }
  0xee   : > { %v1867_v46 = vpack.c.bf16 %v489_v42, %v488_v37  ;;  %v523_v47 = vld [vmem:[#allocation2 + $0x40] sm:$0xff]  ;;  %v2223_v56 = vld [vmem:[#allocation2 + $0x10] sm:$0xff] }
  0xef   : > { %471 = vst.msk [vmem:[#allocation2 + $0x81] sm:$0xff] %vm441_vm1, %v440_v43  ;;  %v438_v48 = vmax.f32 %v414_v40, %v430_v44  ;;  %685 = vrot.lane.b32.xlu1 %v1871_v45, %s2066_s17  ;;  %v1876_v52 = vpack.c.bf16 %v523_v47, %v522_v49  ;;  %v539_v54 = vld [vmem:[#allocation2 + $0x41] sm:$0xff]  ;;  %v554_v61 = vld [vmem:[#allocation2 + $0x32] sm:$0xff] }
  0xf0   : > { %657 = vrot.lane.b32.xlu0 %v1867_v46, %s2067_s18  ;;  %v490_v50 = vld [vmem:[#allocation2 + $0x21] sm:$0xff]  ;;  %v1880_v57 = vpack.c.bf16 %v539_v54, %v491_v51  ;;  %v592_v34 = vld [vmem:[#allocation2 + $0x91] sm:$0xff] }
  0xf1   : > { %469 = vst.msk [vmem:[#allocation2 + $0x61] sm:$0xff] %vm441_vm1, %v438_v48  ;;  %v1868_v53 = vpack.c.bf16 %v491_v51, %v490_v50  ;;  %v521_v55 = vld [vmem:[#allocation2 + $0x20] sm:$0xff]  ;;  %v1879_v63 = vpack.c.bf16 %v490_v50, %v489_v42  ;;  %v608_v36 = vld [vmem:[#allocation2 + $0x92] sm:$0xff] }
  0xf2   : > { %v1875_v58 = vpack.c.bf16 %v521_v55, %v2223_v56  ;;  %v555_v59 = vld [vmem:[#allocation2 + $0x42] sm:$0xff]  ;;  %v2243_v9 = vpack.c.bf16 %v522_v49, %v521_v55  ;;  %v526_v12 = vld [vmem:[#allocation2 + $0x70] sm:$0xff] }
  0xf3   : > { %715 = vrot.lane.b32.xlu1 %v1876_v52, %s2068_s19  ;;  %v1884_v62 = vpack.c.bf16 %v555_v59, %v554_v61  ;;  %v506_v0 = vld [vmem:[#allocation2 + $0x22] sm:$0xff]  ;;  %v542_v17 = vld [vmem:[#allocation2 + $0x71] sm:$0xff] }
  0xf4   : > { %659 = vrot.lane.b32.xlu0 %v1868_v53, %s2067_s18  ;;  %v1872_v3 = vpack.c.bf16 %v554_v61, %v506_v0  ;;  %v1883_v4 = vpack.c.bf16 %v506_v0, %v505_v41  ;;  %v572_v5 = vld [vmem:[#allocation2 + $0x50] sm:$0xff]  ;;  %v472_v46 = vld [vmem:[#allocation2] sm:$0xff] }
  0xf5   : > { %v2241_v7 = vpack.c.bf16 %v572_v5, %v523_v47  ;;  %v588_v10 = vld [vmem:[#allocation2 + $0x51] sm:$0xff]  ;;  %v1863_v49 = vpack.c.bf16 %v2223_v56, %v472_v46 }
  0xf6   : > { %v1892_v11 = vpack.c.bf16 %v588_v10, %v539_v54  ;;  %v527_v13 = vld [vmem:[#allocation2 + $0x80] sm:$0xff]  ;;  %v604_v14 = vld [vmem:[#allocation2 + $0x52] sm:$0xff] }
  0xf7   : > { %743 = vrot.lane.b32.xlu1 %v1880_v57, %s2069_s20  ;;  %v1878_v15 = vpack.c.bf16 %v527_v13, %v526_v12  ;;  %v1896_v16 = vpack.c.bf16 %v604_v14, %v555_v59  ;;  %v543_v18 = vld [vmem:[#allocation2 + $0x81] sm:$0xff]  ;;  %v558_v20 = vld [vmem:[#allocation2 + $0x72] sm:$0xff]  ;;  %v1890_v27 = vpack.c.bf16 %v576_v25, %v527_v13 }
  0xf8   : > { %713 = vrot.lane.b32.xlu0 %v1875_v58, %s2068_s19  ;;  %v1882_v19 = vpack.c.bf16 %v543_v18, %v542_v17  ;;  %v559_v21 = vld [vmem:[#allocation2 + $0x82] sm:$0xff]  ;;  %v1894_v35 = vpack.c.bf16 %v592_v34, %v543_v18 }
  0xf9   : > { %v525_v22 = vld [vmem:[#allocation2 + $0x60] sm:$0xff]  ;;  %v1886_v23 = vpack.c.bf16 %v559_v21, %v558_v20  ;;  %v1898_v37 = vpack.c.bf16 %v608_v36, %v559_v21 }
  0xfa   : > { %v1877_v24 = vpack.c.bf16 %v525_v22, %v572_v5  ;;  %v541_v26 = vld [vmem:[#allocation2 + $0x61] sm:$0xff]  ;;  %v2263_v33 = vpack.c.bf16 %v526_v12, %v525_v22 }
  0xfb   : > { %771 = vrot.lane.b32.xlu1 %v1884_v62, %s2070_s27  ;;  %v1881_v28 = vpack.c.bf16 %v541_v26, %v588_v10  ;;  %v557_v29 = vld [vmem:[#allocation2 + $0x62] sm:$0xff]  ;;  %v1870_v30 = vpack.c.bf16 %v542_v17, %v541_v26 }
  0xfc   : > { %741 = vrot.lane.b32.xlu0 %v1879_v63, %s2069_s20  ;;  %v1885_v31 = vpack.c.bf16 %v557_v29, %v604_v14  ;;  %v1874_v32 = vpack.c.bf16 %v558_v20, %v557_v29 }
  0xff   : > { %687 = vrot.lane.b32.xlu1 %v1872_v3, %s2066_s17 }
 0x100   : > { %769 = vrot.lane.b32.xlu0 %v1883_v4, %s2070_s27 }
 0x103   : > { %799 = vrot.lane.b32.xlu1 %v2241_v7, %s2071_s30 }
 0x104   : > { %797 = vrot.lane.b32.xlu0 %v2243_v9, %s2071_s30 }
 0x107   : > { %827 = vrot.lane.b32.xlu1 %v1892_v11, %s2072_s8 }
 0x108   : > { %825 = vrot.lane.b32.xlu0 %v1868_v53, %s2072_s8 }
 0x10b   : > { %661 = vrot.lane.b32.xlu1 %v1892_v11, %s2067_s18 }
 0x10c   : > { %853 = vrot.lane.b32.xlu0 %v1872_v3, %s2073_s9 }
 0x10f   : > { %719 = vrot.lane.b32.xlu1 %v1878_v15, %s2068_s19 }
 0x110   : > { %855 = vrot.lane.b32.xlu0 %v1896_v16, %s2073_s9 }
 0x113   : > { %747 = vrot.lane.b32.xlu1 %v1882_v19, %s2069_s20 }
 0x114   : > { %689 = vrot.lane.b32.xlu0 %v1896_v16, %s2066_s17 }
 0x117   : > { %775 = vrot.lane.b32.xlu1 %v1886_v23, %s2070_s27 }
 0x118   : > { %717 = vrot.lane.b32.xlu0 %v1877_v24, %s2068_s19 }
 0x11b   : > { %803 = vrot.lane.b32.xlu1 %v1890_v27, %s2071_s30 }
 0x11c   : > { %745 = vrot.lane.b32.xlu0 %v1881_v28, %s2069_s20 }
 0x11f   : > { %663 = vrot.lane.b32.xlu1 %v1870_v30, %s2067_s18 }
 0x120   : > { %773 = vrot.lane.b32.xlu0 %v1885_v31, %s2070_s27 }
 0x123   : > { %691 = vrot.lane.b32.xlu1 %v1874_v32, %s2066_s17 }
 0x124   : > { %801 = vrot.lane.b32.xlu0 %v2263_v33, %s2071_s30 }
 0x127   : > { %831 = vrot.lane.b32.xlu1 %v1894_v35, %s2072_s8 }
 0x128   : > { %829 = vrot.lane.b32.xlu0 %v1870_v30, %s2072_s8 }
 0x12b   : > { %859 = vrot.lane.b32.xlu1 %v1898_v37, %s2073_s9 }
 0x12c   : > { %857 = vrot.lane.b32.xlu0 %v1874_v32, %s2073_s9 }
 0x161   : > { %v686_v38 = vpop.permute.xlu1 %685 }
 0x162   : > { %v658_v39 = vpop.permute.xlu0 %657 }
 0x163   : > { %v863_v52 = vsel %vm441_vm1, %v1863_v49, %v658_v39 }
 0x164   : > { %v875_v57 = vsel %vm873_vm3, %v863_v52, %v686_v38 }
 0x165   : > { %v716_v40 = vpop.permute.xlu1 %715 }
 0x166   : > { %v660_v41 = vpop.permute.xlu0 %659 }
 0x167   : > { %v866_v50 = vsel %vm441_vm1, %v2243_v9, %v660_v41  ;;  %v1805_v41 = vld [vmem:[%s2488_s4] ss:$0 sm:$0xff] }
 0x169   : > { %v744_v42 = vpop.permute.xlu1 %743 }
 0x16a   : > { %v714_v43 = vpop.permute.xlu0 %713 }
 0x16b   : > { %v884_v58 = vsel %vm882_vm5, %v875_v57, %v714_v43 }
 0x16d   : > { %v772_v44 = vpop.permute.xlu1 %771 }
 0x16e   : > { %v742_v45 = vpop.permute.xlu0 %741 }
 0x16f   : > { %v893_v60 = vsel %vm891_vm6, %v884_v58, %v742_v45  ;;  %v1103_v58 = vld [vmem:[#allocation3 + $0x1] sm:$0xff] }
 0x171   : > { %v688_v47 = vpop.permute.xlu1 %687 }
 0x172   : > { %v770_v48 = vpop.permute.xlu0 %769  ;;  %v877_v51 = vsel %vm873_vm3, %v866_v50, %v688_v47 }
 0x173   : > { %v886_v55 = vsel %vm882_vm5, %v877_v51, %v716_v40  ;;  %v902_v62 = vsel %vm900_vm7, %v893_v60, %v770_v48  ;;  %v1119_v60 = vld [vmem:[#allocation3 + $0x2] sm:$0xff] }
 0x174   : > { %v895_v61 = vsel %vm891_vm6, %v886_v55, %v744_v42 }
 0x175   : > { %v800_v53 = vpop.permute.xlu1 %799  ;;  %v904_v0 = vsel %vm900_vm7, %v895_v61, %v772_v44 }
 0x176   : > { %v798_v54 = vpop.permute.xlu0 %797  ;;  %v913_v5 = vsel %vm909_vm8, %v904_v0, %v800_v53 }
 0x177   : > { %v911_v63 = vsel %vm909_vm8, %v902_v62, %v798_v54 }
 0x179   : > { %v828_v56 = vpop.permute.xlu1 %827 }
 0x17a   : > { %v826_v59 = vpop.permute.xlu0 %825  ;;  %v922_v6 = vsel %vm918_vm9, %v913_v5, %v828_v56 }
 0x17b   : > { %v920_v1 = vsel %vm918_vm9, %v911_v63, %v826_v59 }
 0x17d   : > { %v662_v2 = vpop.permute.xlu1 %661 }
 0x17e   : > { %v854_v3 = vpop.permute.xlu0 %853  ;;  %v869_v24 = vsel %vm441_vm1, %v2241_v7, %v662_v2 }
 0x17f   : > { %v929_v4 = vsel %vm927_vm10, %v920_v1, %v854_v3 }
 0x180   : > { %1981 = vmatprep.mubr.msk.bf16.mxu1 %vm963_vm11, %v929_v4 }
 0x181   : > { %v720_v9 = vpop.permute.xlu1 %719 }
 0x182   : > { %v856_v10 = vpop.permute.xlu0 %855 }
 0x183   : > { %v931_v11 = vsel %vm927_vm10, %v922_v6, %v856_v10 }
 0x184   : > { %1982 = vmatmul.mubr.msk.bf16.vlgmr.msra.gmra.mxu1 %vm963_vm11, %v931_v11 }
 0x185   : > { %v748_v12 = vpop.permute.xlu1 %747 }
 0x186   : > { %v690_v13 = vpop.permute.xlu0 %689 }
 0x187   : > { %v879_v26 = vsel %vm873_vm3, %v869_v24, %v690_v13 }
 0x189   : > { %v776_v14 = vpop.permute.xlu1 %775 }
 0x18a   : > { %v718_v15 = vpop.permute.xlu0 %717 }
 0x18b   : > { %v888_v28 = vsel %vm882_vm5, %v879_v26, %v718_v15 }
 0x18d   : > { %v804_v16 = vpop.permute.xlu1 %803 }
 0x18e   : > { %v746_v17 = vpop.permute.xlu0 %745 }
 0x18f   : > { %v897_v32 = vsel %vm891_vm6, %v888_v28, %v746_v17 }
 0x191   : > { %v664_v18 = vpop.permute.xlu1 %663 }
 0x192   : > { %v774_v19 = vpop.permute.xlu0 %773  ;;  %v872_v20 = vsel %vm441_vm1, %v2263_v33, %v664_v18  ;;  %vm1530_vm1 = vcmask 457728  }
 0x193   : > { %v906_v34 = vsel %vm900_vm7, %v897_v32, %v774_v19 }
 0x195   : > { %v692_v21 = vpop.permute.xlu1 %691 }
 0x196   : > { %v802_v22 = vpop.permute.xlu0 %801  ;;  %v881_v23 = vsel %vm873_vm3, %v872_v20, %v692_v21 }
 0x197   : > { %v890_v25 = vsel %vm882_vm5, %v881_v23, %v720_v9  ;;  %v915_v7 = vsel %vm909_vm8, %v906_v34, %v802_v22 }
 0x198   : > { %v899_v27 = vsel %vm891_vm6, %v890_v25, %v748_v12 }
 0x199   : > { %v908_v29 = vsel %vm900_vm7, %v899_v27, %v776_v14  ;;  %v832_v30 = vpop.permute.xlu1 %831 }
 0x19a   : > { %v830_v31 = vpop.permute.xlu0 %829  ;;  %v917_v33 = vsel %vm909_vm8, %v908_v29, %v804_v16 }
 0x19b   : > { %v926_v35 = vsel %vm918_vm9, %v917_v33, %v832_v30  ;;  %v924_v36 = vsel %vm918_vm9, %v915_v7, %v830_v31  ;;  %v2052_v7 = vld [vmem:[%s2489_s5 + $0x20] ss:$0 sps:$4 sm:$0xff]  }
 0x19c   : > { %2018 = vmatprep.subr.msk.bf16.mxu0 %vm1599_vm13, %v2052_v7  ;;  %2019 = vmatprep.subr.msk.bf16.mxu1 %vm1599_vm13, %v2052_v7 }
 0x19d   : > { %v860_v37 = vpop.permute.xlu1 %859 }
 0x19e   : > { %v858_v38 = vpop.permute.xlu0 %857  ;;  %v935_v39 = vsel %vm927_vm10, %v926_v35, %v860_v37  ;;  %v1601_v37 = vsel %vm1599_vm13, %v2052_v7, 0 }
 0x19f   : > { %v933_v40 = vsel %vm927_vm10, %v924_v36, %v858_v38  ;;  %1990 = vmatpush3.bf16.msra.mxu0 %v1601_v37  ;;  %2012 = vmatpush3.bf16.msra.mxu1 %v1601_v37 }
 0x1a0   : > { %1985 = vmatprep.mubr.msk.bf16.mxu1 %vm963_vm11, %v933_v40 }
 0x1a1   : > { %1986 = vmatmul.mubr.msk.bf16.gmra.mxu1 %vm963_vm11, %v935_v39  ;;  %v2053_v39 = vld [vmem:[%s2489_s5 + $0x18] sm:$0xff]  }
 0x1a2   : > { %1991 = vmatprep.subr.bf16.mxu0 %v2053_v39  ;;  %2008 = vmatprep.subr.bf16.mxu1 %v2053_v39 }
 0x1a3   : > { %1992 = vmatpush3.bf16.msra.mxu0 %v2053_v39  ;;  %2013 = vmatpush3.bf16.msra.mxu1 %v2053_v39 }
 0x244   : > { %v1983_v42 = vpop.f32.mrf.mxu1 }
 0x245   : > { %v1019_v43 = vadd.f32 %v1983_v42, %v1805_v41 }
 0x246   : > { %v1010_v44 = vpop.f32.mrf.mxu1 }
 0x247   : > { %v1043_v45 = vmul.f32 0.1, %v1019_v43  ;;  %v1011_v46 = vadd.f32 %v1805_v41, %v1010_v44  ;;  %v2054_v44 = vld [vmem:[%s2489_s5 + $0x10] sm:$0xff]  }
 0x248   : > { %v1984_v47 = vpop.f32.mrf.mxu1  ;;  %1993 = vmatprep.subr.bf16.mxu0 %v2054_v44  ;;  %2009 = vmatprep.subr.bf16.mxu1 %v2054_v44 }
 0x249   : > { %v1051_v48 = vmax.f32 %v1019_v43, %v1043_v45  ;;  %v1041_v49 = vmul.f32 0.1, %v1011_v46  ;;  %v1022_v50 = vadd.f32 %v1984_v47, %v1805_v41  ;;  %1994 = vmatpush3.bf16.msra.mxu0 %v2054_v44  ;;  %2014 = vmatpush3.bf16.msra.mxu1 %v2054_v44 }
 0x24a   : > { %v1013_v51 = vpop.f32.mrf.mxu1 }
 0x24b   : > { %1081 = vst.msk [vmem:[#allocation3 + $0x31] sm:$0xff] %vm873_vm3, %v1051_v48  ;;  %v1049_v52 = vmax.f32 %v1011_v46, %v1041_v49  ;;  %v1044_v53 = vmul.f32 0.1, %v1022_v50  ;;  %v1014_v54 = vadd.f32 %v1805_v41, %v1013_v51  ;;  %v2055_v49 = vld [vmem:[%s2489_s5 + $0x8] sm:$0xff]  }
 0x24c   : > { %1995 = vmatprep.subr.bf16.mxu0 %v2055_v49  ;;  %2010 = vmatprep.subr.bf16.mxu1 %v2055_v49 }
 0x24d   : > { %1079 = vst.msk [vmem:[#allocation3 + $0x11] sm:$0xff] %vm873_vm3, %v1049_v52  ;;  %v1052_v8 = vmax.f32 %v1022_v50, %v1044_v53  ;;  %v1042_v55 = vmul.f32 0.1, %v1014_v54  ;;  %1996 = vmatpush3.bf16.msra.mxu0 %v2055_v49  ;;  %v2056_v53 = vld [vmem:[%s2489_s5] sm:$0xff]   ;;  %2015 = vmatpush3.bf16.msra.mxu1 %v2055_v49 }
 0x24e   : > { %1997 = vmatprep.subr.bf16.mxu0 %v2056_v53  ;;  %2011 = vmatprep.subr.bf16.mxu1 %v2056_v53 }
 0x24f   : > { %1082 = vst.msk [vmem:[#allocation3 + $0x41] sm:$0xff] %vm873_vm3, %v1052_v8  ;;  %v1050_v57 = vmax.f32 %v1014_v54, %v1042_v55  ;;  %v1191_v54 = vld [vmem:[#allocation3 + $0x90] sm:$0xff] }
 0x251   : > { %1080 = vst.msk [vmem:[#allocation3 + $0x21] sm:$0xff] %vm873_vm3, %v1050_v57  ;;  %1998 = vmatpush3.bf16.msra.mxu0 %v2056_v53  ;;  %v1207_v57 = vld [vmem:[#allocation3 + $0x91] sm:$0xff]  ;;  %2016 = vmatpush3.bf16.msra.mxu1 %v2056_v53 }
 0x252   : > { %v2339_v0 = vld [vmem:[#allocation3 + $0x30] sm:$0xff] }
 0x253   : > { %v1153_v3 = vld [vmem:[#allocation3 + $0x31] sm:$0xff] }
 0x254   : > { %v2329_v56 = vld [vmem:[#allocation3 + $0x11] sm:$0xff] }
 0x255   : > { %v1903_v59 = vpack.c.bf16 %v2329_v56, %v1103_v58  ;;  %v2332_v61 = vld [vmem:[#allocation3 + $0x12] sm:$0xff] }
 0x256   : > { %v1907_v62 = vpack.c.bf16 %v2332_v61, %v1119_v60  ;;  %v2336_v63 = vld [vmem:[#allocation3 + $0x40] sm:$0xff]  ;;  %v1169_v13 = vld [vmem:[#allocation3 + $0x32] sm:$0xff] }
 0x257   : > { %1272 = vrot.lane.b32.xlu0 %v1903_v59, %s2066_s17  ;;  %v1912_v1 = vpack.c.bf16 %v2336_v63, %v2339_v0  ;;  %v1154_v2 = vld [vmem:[#allocation3 + $0x41] sm:$0xff]  ;;  %v2355_v31 = vld [vmem:[#allocation3 + $0x10] sm:$0xff] }
 0x258   : > { %v1916_v5 = vpack.c.bf16 %v1154_v2, %v1153_v3  ;;  %v1170_v9 = vld [vmem:[#allocation3 + $0x42] sm:$0xff] }
 0x259   : > { %v1920_v15 = vpack.c.bf16 %v1170_v9, %v1169_v13  ;;  %v1105_v19 = vld [vmem:[#allocation3 + $0x21] sm:$0xff] }
 0x25a   : > { %v1904_v24 = vpack.c.bf16 %v1153_v3, %v1105_v19  ;;  %v1121_v27 = vld [vmem:[#allocation3 + $0x22] sm:$0xff]  ;;  %v1915_v36 = vpack.c.bf16 %v1105_v19, %v2329_v56 }
 0x25b   : > { %1300 = vrot.lane.b32.xlu0 %v1907_v62, %s2069_s20  ;;  %v2350_v29 = vpack.c.bf16 %v1169_v13, %v1121_v27  ;;  %v1136_v30 = vld [vmem:[#allocation3 + $0x20] sm:$0xff] }
 0x25c   : > { %v1911_v32 = vpack.c.bf16 %v1136_v30, %v2355_v31  ;;  %v2385_v46 = vpack.c.bf16 %v2339_v0, %v1136_v30 }
 0x25f   : > { %1330 = vrot.lane.b32.xlu0 %v1912_v1, %s2071_s30 }
 0x261   : > { %v1987_v4 = vpop.f32.mrf.mxu1 }
 0x262   : > { %v1035_v6 = vadd.f32 %v1987_v4, %v1805_v41  ;;  %v1223_v4 = vld [vmem:[#allocation3 + $0x92] sm:$0xff] }
 0x263   : > { %v1026_v10 = vpop.f32.mrf.mxu1  ;;  %1358 = vrot.lane.b32.xlu0 %v1916_v5, %s2073_s9 }
 0x264   : > { %v1047_v11 = vmul.f32 0.1, %v1035_v6  ;;  %v1027_v12 = vadd.f32 %v1805_v41, %v1026_v10 }
 0x265   : > { %v1988_v14 = vpop.f32.mrf.mxu1 }
 0x266   : > { %v1055_v16 = vmax.f32 %v1035_v6, %v1047_v11  ;;  %v1045_v17 = vmul.f32 0.1, %v1027_v12  ;;  %v1038_v18 = vadd.f32 %v1988_v14, %v1805_v41 }
 0x267   : > { %v1029_v20 = vpop.f32.mrf.mxu1  ;;  %1386 = vrot.lane.b32.xlu0 %v1920_v15, %s2074_s12 }
 0x268   : > { %1085 = vst.msk [vmem:[#allocation3 + $0x71] sm:$0xff] %vm873_vm3, %v1055_v16  ;;  %v1053_v21 = vmax.f32 %v1027_v12, %v1045_v17  ;;  %v1048_v22 = vmul.f32 0.1, %v1038_v18  ;;  %v1030_v23 = vadd.f32 %v1805_v41, %v1029_v20  ;;  %v1919_v41 = vpack.c.bf16 %v1121_v27, %v2332_v61  ;;  %v1087_v20 = vld [vmem:[#allocation3] sm:$0xff] }
 0x26a   : > { %1083 = vst.msk [vmem:[#allocation3 + $0x51] sm:$0xff] %vm873_vm3, %v1053_v21  ;;  %v1056_v25 = vmax.f32 %v1038_v18, %v1048_v22  ;;  %v1046_v26 = vmul.f32 0.1, %v1030_v23  ;;  %v1899_v22 = vpack.c.bf16 %v2355_v31, %v1087_v20 }
 0x26b   : > { %1274 = vrot.lane.b32.xlu0 %v1904_v24, %s2066_s17 }
 0x26c   : > { %1086 = vst.msk [vmem:[#allocation3 + $0x81] sm:$0xff] %vm873_vm3, %v1056_v25  ;;  %v1054_v28 = vmax.f32 %v1030_v23, %v1046_v26 }
 0x26e   : > { %1084 = vst.msk [vmem:[#allocation3 + $0x61] sm:$0xff] %vm873_vm3, %v1054_v28 }
 0x26f   : > { %1302 = vrot.lane.b32.xlu0 %v2350_v29, %s2069_s20  ;;  %v1141_v42 = vld [vmem:[#allocation3 + $0x70] sm:$0xff] }
 0x270   : > { %v1157_v47 = vld [vmem:[#allocation3 + $0x71] sm:$0xff] }
 0x271   : > { %v2358_v33 = vld [vmem:[#allocation3 + $0x51] sm:$0xff] }
 0x272   : > { %v2361_v34 = vpack.c.bf16 %v2358_v33, %v1154_v2  ;;  %v2367_v35 = vld [vmem:[#allocation3 + $0x52] sm:$0xff] }
 0x273   : > { %1328 = vrot.lane.b32.xlu0 %v1911_v32, %s2071_s30  ;;  %v1909_v38 = vpack.c.bf16 %v2367_v35, %v1170_v9  ;;  %v1142_v40 = vld [vmem:[#allocation3 + $0x80] sm:$0xff]  ;;  %v1173_v51 = vld [vmem:[#allocation3 + $0x72] sm:$0xff] }
 0x274   : > { %1276 = vrot.lane.b32.xlu1 %v2361_v34, %s2066_s17  ;;  %v1914_v43 = vpack.c.bf16 %v1142_v40, %v1141_v42  ;;  %v1158_v45 = vld [vmem:[#allocation3 + $0x81] sm:$0xff]  ;;  %v1926_v8 = vpack.c.bf16 %v1191_v54, %v1142_v40  ;;  %v1187_v55 = vld [vmem:[#allocation3 + $0x50] sm:$0xff] }
 0x275   : > { %v1918_v48 = vpack.c.bf16 %v1158_v45, %v1157_v47  ;;  %v1174_v50 = vld [vmem:[#allocation3 + $0x82] sm:$0xff]  ;;  %v2401_v58 = vpack.c.bf16 %v1187_v55, %v2336_v63  ;;  %v1930_v56 = vpack.c.bf16 %v1207_v57, %v1158_v45 }
 0x276   : > { %v1922_v52 = vpack.c.bf16 %v1174_v50, %v1173_v51  ;;  %v1109_v59 = vld [vmem:[#allocation3 + $0x61] sm:$0xff]  ;;  %v1934_v5 = vpack.c.bf16 %v1223_v4, %v1174_v50 }
 0x277   : > { %1356 = vrot.lane.b32.xlu0 %v1915_v36, %s2073_s9  ;;  %v1906_v60 = vpack.c.bf16 %v1157_v47, %v1109_v59  ;;  %v1125_v61 = vld [vmem:[#allocation3 + $0x62] sm:$0xff]  ;;  %v1917_v1 = vpack.c.bf16 %v1109_v59, %v2358_v33 }
 0x278   : > { %1304 = vrot.lane.b32.xlu1 %v1909_v38, %s2069_s20  ;;  %v1910_v62 = vpack.c.bf16 %v1173_v51, %v1125_v61  ;;  %v1140_v0 = vld [vmem:[#allocation3 + $0x60] sm:$0xff]  ;;  %v1921_v2 = vpack.c.bf16 %v1125_v61, %v2367_v35 }
 0x279   : > { %v1913_v63 = vpack.c.bf16 %v1140_v0, %v1187_v55  ;;  %v1925_v3 = vpack.c.bf16 %v1141_v42, %v1140_v0 }
 0x27b   : > { %1384 = vrot.lane.b32.xlu0 %v1919_v41, %s2074_s12 }
 0x27c   : > { %1334 = vrot.lane.b32.xlu1 %v1914_v43, %s2071_s30 }
 0x27f   : > { %1412 = vrot.lane.b32.xlu0 %v2385_v46, %s2075_s23 }
 0x280   : > { %1362 = vrot.lane.b32.xlu1 %v1918_v48, %s2073_s9 }
 0x283   : > { %1440 = vrot.lane.b32.xlu0 %v1904_v24, %s2076_s28 }
 0x284   : > { %1390 = vrot.lane.b32.xlu1 %v1922_v52, %s2074_s12 }
 0x287   : > { %1468 = vrot.lane.b32.xlu0 %v2350_v29, %s2077_s29 }
 0x288   : > { %1418 = vrot.lane.b32.xlu1 %v1926_v8, %s2075_s23 }
 0x28b   : > { %1414 = vrot.lane.b32.xlu0 %v2401_v58, %s2075_s23 }
 0x28c   : > { %1446 = vrot.lane.b32.xlu1 %v1930_v56, %s2076_s28 }
 0x28f   : > { %1442 = vrot.lane.b32.xlu0 %v2361_v34, %s2076_s28 }
 0x290   : > { %1278 = vrot.lane.b32.xlu1 %v1906_v60, %s2066_s17 }
 0x293   : > { %1470 = vrot.lane.b32.xlu0 %v1909_v38, %s2077_s29 }
 0x294   : > { %1306 = vrot.lane.b32.xlu1 %v1910_v62, %s2069_s20 }
 0x298   : > { %1332 = vrot.lane.b32.xlu1 %v1913_v63, %s2071_s30  ;;  %s1862_s30 = sshll.u32 %s2493_s25, 6 }
 0x299   : > { %s2463_s10 = scalar_lea.vmem %s2491_s7, %s1862_s30 }
 0x29c   : > { %1360 = vrot.lane.b32.xlu1 %v1917_v1, %s2073_s9 }
 0x2a0   : > { %1388 = vrot.lane.b32.xlu1 %v1921_v2, %s2074_s12 }
 0x2a4   : > { %1416 = vrot.lane.b32.xlu1 %v1925_v3, %s2075_s23 }
 0x2a8   : > { %1444 = vrot.lane.b32.xlu1 %v1906_v60, %s2076_s28 }
 0x2ac   : > { %1472 = vrot.lane.b32.xlu1 %v1910_v62, %s2077_s29 }
 0x2b0   : > { %1474 = vrot.lane.b32.xlu1 %v1934_v5, %s2077_s29 }
 0x2c9   : > { %v1273_v6 = vpop.permute.xlu0 %1272 }
 0x2ca   : > { %v1478_v25 = vsel %vm873_vm3, %v1899_v22, %v1273_v6 }
 0x2cd   : > { %v1301_v9 = vpop.permute.xlu0 %1300 }
 0x2ce   : > { %v1489_v26 = vsel %vm891_vm6, %v1478_v25, %v1301_v9 }
 0x2d1   : > { %v1331_v10 = vpop.permute.xlu0 %1330 }
 0x2d5   : > { %v1359_v11 = vpop.permute.xlu0 %1358 }
 0x2d9   : > { %v1387_v12 = vpop.permute.xlu0 %1386 }
 0x2dd   : > { %v1275_v13 = vpop.permute.xlu0 %1274 }
 0x2de   : > { %v1481_v31 = vsel %vm873_vm3, %v2385_v46, %v1275_v13 }
 0x2e1   : > { %v1303_v14 = vpop.permute.xlu0 %1302 }
 0x2e2   : > { %v1491_v35 = vsel %vm891_vm6, %v1481_v31, %v1303_v14 }
 0x2e3   : > { %v1499_v38 = vsel %vm909_vm8, %v1491_v35, %v1331_v10  ;;  %v1849_v10 = vld [vmem:[%s2490_s6] ss:$0 sm:$0xff] }
 0x2e4   : > { %v1507_v41 = vsel %vm927_vm10, %v1499_v38, %v1359_v11 }
 0x2e5   : > { %v1329_v15 = vpop.permute.xlu0 %1328  ;;  %v1516_v44 = vsel %vm1512_vm15, %v1507_v41, %v1387_v12 }
 0x2e6   : > { %v1277_v16 = vpop.permute.xlu1 %1276  ;;  %v1497_v27 = vsel %vm909_vm8, %v1489_v26, %v1329_v15 }
 0x2e7   : > { %v1484_v57 = vsel %vm873_vm3, %v2401_v58, %v1277_v16 }
 0x2e9   : > { %v1357_v17 = vpop.permute.xlu0 %1356 }
 0x2ea   : > { %v1305_v18 = vpop.permute.xlu1 %1304  ;;  %v1505_v29 = vsel %vm927_vm10, %v1497_v27, %v1357_v17 }
 0x2eb   : > { %v1493_v56 = vsel %vm891_vm6, %v1484_v57, %v1305_v18 }
 0x2ed   : > { %v1385_v19 = vpop.permute.xlu0 %1384 }
 0x2ee   : > { %v1335_v21 = vpop.permute.xlu1 %1334  ;;  %v1514_v32 = vsel %vm1512_vm15, %v1505_v29, %v1385_v19 }
 0x2f1   : > { %v1413_v23 = vpop.permute.xlu0 %1412 }
 0x2f2   : > { %v1363_v24 = vpop.permute.xlu1 %1362  ;;  %v1523_v33 = vsel %vm1521_vm14, %v1514_v32, %v1413_v23 }
 0x2f5   : > { %v1441_v28 = vpop.permute.xlu0 %1440 }
 0x2f6   : > { %v1391_v30 = vpop.permute.xlu1 %1390  ;;  %v1532_v34 = vsel %vm1530_vm1, %v1523_v33, %v1441_v28 }
 0x2f9   : > { %v1469_v7 = vpop.permute.xlu0 %1468 }
 0x2fa   : > { %v1540_v36 = vsel %vm347_vm0, %v1532_v34, %v1469_v7  ;;  %v1419_v37 = vpop.permute.xlu1 %1418 }
 0x2fb   : > { %1999 = vmatprep.mubr.msk.bf16.mxu0 %vm1590_vm2, %v1540_v36 }
 0x2fd   : > { %v1415_v39 = vpop.permute.xlu0 %1414 }
 0x2fe   : > { %v1447_v40 = vpop.permute.xlu1 %1446  ;;  %v1525_v45 = vsel %vm1521_vm14, %v1516_v44, %v1415_v39 }
 0x301   : > { %v1443_v42 = vpop.permute.xlu0 %1442 }
 0x302   : > { %v1279_v43 = vpop.permute.xlu1 %1278  ;;  %v1534_v46 = vsel %vm1530_vm1, %v1525_v45, %v1443_v42 }
 0x303   : > { %v1487_v52 = vsel %vm873_vm3, %v1925_v3, %v1279_v43 }
 0x305   : > { %v1471_v47 = vpop.permute.xlu0 %1470 }
 0x306   : > { %v1542_v48 = vsel %vm347_vm0, %v1534_v46, %v1471_v47  ;;  %v1307_v49 = vpop.permute.xlu1 %1306 }
 0x307   : > { %2000 = vmatmul.mubr.msk.bf16.vlgmr.msra.gmra.mxu0 %vm1590_vm2, %v1542_v48  ;;  %v1495_v54 = vsel %vm891_vm6, %v1487_v52, %v1307_v49 }
 0x308   : > { %v1503_v8 = vsel %vm909_vm8, %v1495_v54, %v1335_v21 }
 0x309   : > { %v1511_v59 = vsel %vm927_vm10, %v1503_v8, %v1363_v24 }
 0x30a   : > { %v1333_v50 = vpop.permute.xlu1 %1332  ;;  %v1520_v63 = vsel %vm1512_vm15, %v1511_v59, %v1391_v30 }
 0x30b   : > { %v1501_v60 = vsel %vm909_vm8, %v1493_v56, %v1333_v50  ;;  %v1529_v4 = vsel %vm1521_vm14, %v1520_v63, %v1419_v37 }
 0x30c   : > { %v1538_v5 = vsel %vm1530_vm1, %v1529_v4, %v1447_v40 }
 0x30e   : > { %v1361_v51 = vpop.permute.xlu1 %1360 }
 0x30f   : > { %v1509_v62 = vsel %vm927_vm10, %v1501_v60, %v1361_v51 }
 0x312   : > { %v1389_v53 = vpop.permute.xlu1 %1388 }
 0x313   : > { %v1518_v0 = vsel %vm1512_vm15, %v1509_v62, %v1389_v53 }
 0x316   : > { %v1417_v55 = vpop.permute.xlu1 %1416 }
 0x317   : > { %v1527_v1 = vsel %vm1521_vm14, %v1518_v0, %v1417_v55 }
 0x31a   : > { %v1445_v61 = vpop.permute.xlu1 %1444 }
 0x31b   : > { %v1536_v2 = vsel %vm1530_vm1, %v1527_v1, %v1445_v61 }
 0x31e   : > { %v1473_v3 = vpop.permute.xlu1 %1472 }
 0x31f   : > { %v1544_v58 = vsel %vm347_vm0, %v1536_v2, %v1473_v3 }
 0x320   : > { %2003 = vmatprep.mubr.msk.bf16.mxu1 %vm1590_vm2, %v1544_v58 }
 0x322   : > { %v1475_v6 = vpop.permute.xlu1 %1474 }
 0x323   : > { %v1546_v9 = vsel %vm347_vm0, %v1538_v5, %v1475_v6 }
 0x324   : > { %2004 = vmatmul.mubr.msk.bf16.vlgmr.msra.gmra.mxu1 %vm1590_vm2, %v1546_v9 }
 0x3c7   : > { %v2001_v11 = vpop.f32.mrf.mxu0 }
 0x3c8   : > { %v1646_v12 = vadd.f32 %v2001_v11, %v1849_v10 }
 0x3c9   : > { %v1637_v13 = vpop.f32.mrf.mxu0 }
 0x3ca   : > { %v1670_v14 = vmul.f32 0.1, %v1646_v12  ;;  %v1638_v15 = vadd.f32 %v1849_v10, %v1637_v13 }
 0x3cb   : > { %v2002_v16 = vpop.f32.mrf.mxu0 }
 0x3cc   : > { %v1678_v17 = vmax.f32 %v1646_v12, %v1670_v14  ;;  %v1668_v18 = vmul.f32 0.1, %v1638_v15  ;;  %v1649_v19 = vadd.f32 %v2002_v16, %v1849_v10 }
 0x3cd   : > { %v1640_v20 = vpop.f32.mrf.mxu0 }
 0x3ce   : > { %1686 = vst.msk [vmem:[%s2463_s10 + $0x10] sm:$0xff] %vm873_vm3, %v1678_v17  ;;  %v1676_v21 = vmax.f32 %v1638_v15, %v1668_v18  ;;  %v1671_v22 = vmul.f32 0.1, %v1649_v19  ;;  %v1641_v23 = vadd.f32 %v1849_v10, %v1640_v20 }
 0x3d0   : > { %1684 = vst.msk [vmem:[%s2463_s10] sm:$0xff] %vm873_vm3, %v1676_v21  ;;  %v1679_v24 = vmax.f32 %v1649_v19, %v1671_v22  ;;  %v1669_v25 = vmul.f32 0.1, %v1641_v23 }
 0x3d2   : > { %1687 = vst.msk [vmem:[%s2463_s10 + $0x18] sm:$0xff] %vm873_vm3, %v1679_v24  ;;  %v1677_v26 = vmax.f32 %v1641_v23, %v1669_v25 }
 0x3d4   : > { %1685 = vst.msk [vmem:[%s2463_s10 + $0x8] sm:$0xff] %vm873_vm3, %v1677_v26 }
 0x3e4   : > { %v2005_v27 = vpop.f32.mrf.mxu1 }
 0x3e5   : > { %v1662_v28 = vadd.f32 %v2005_v27, %v1849_v10 }
 0x3e6   : > { %v1653_v29 = vpop.f32.mrf.mxu1 }
 0x3e7   : > { %v1674_v30 = vmul.f32 0.1, %v1662_v28  ;;  %v1654_v32 = vadd.f32 %v1849_v10, %v1653_v29 }
 0x3e8   : > { %v2006_v33 = vpop.f32.mrf.mxu1 }
 0x3e9   : > { %v1682_v31 = vmax.f32 %v1662_v28, %v1674_v30  ;;  %v1672_v34 = vmul.f32 0.1, %v1654_v32  ;;  %v1665_v7 = vadd.f32 %v2006_v33, %v1849_v10 }
 0x3ea   : > { %v1656_v35 = vpop.f32.mrf.mxu1 }
 0x3eb   : > { %1690 = vst.msk [vmem:[%s2463_s10 + $0x30] sm:$0xff] %vm873_vm3, %v1682_v31  ;;  %v1680_v36 = vmax.f32 %v1654_v32, %v1672_v34  ;;  %v1675_v37 = vmul.f32 0.1, %v1665_v7  ;;  %v1657_v38 = vadd.f32 %v1849_v10, %v1656_v35 }
 0x3ed   : > { %1688 = vst.msk [vmem:[%s2463_s10 + $0x20] sm:$0xff] %vm873_vm3, %v1680_v36  ;;  %v1683_v39 = vmax.f32 %v1665_v7, %v1675_v37  ;;  %v1673_v40 = vmul.f32 0.1, %v1657_v38 }
 0x3ef   : > { %1691 = vst.msk [vmem:[%s2463_s10 + $0x38] sm:$0xff] %vm873_vm3, %v1683_v39  ;;  %v1681_v41 = vmax.f32 %v1657_v38, %v1673_v40 }
 0x3f1   : > { %1689 = vst.msk [vmem:[%s2463_s10 + $0x28] sm:$0xff] %vm873_vm3, %v1681_v41 }
 0x3f2 PF: > { %s17_s24 = sadd.s32 1, %s2063_s24  }
 0x3f3   : > { %p14_p4 = scmp.ge.s32.totalorder %s17_s24, 4  }
 0x3f5   :  { %16 = sbr.rel (!%p14_p4) target bundleno = 1 (0x1), region = 82 }

</bundles_post_ra>
